<compile_context>
chip_gen: v5e
topology: v5e:2x2
jax: 0.10.0
libtpu: 0.0.40
codegen_flags: <defaults>
</compile_context>

<pallas_src>
import functools

import jax
import jax.numpy as jnp
from jax import lax
from jax.experimental import pallas as pl
from jax.experimental.pallas import tpu as pltpu


def _round_up(x, m):
    return ((x + m - 1) // m) * m


def _focal_loss_kernel(logits_ref, tgt_ref, out_ref, *, gamma, n_valid,
                       tile_n, mask_rows):
    i = pl.program_id(0)

    logits = logits_ref[...].astype(jnp.float32)               # (TN, C)
    tgt = tgt_ref[...]                                          # (TN, 1) int32

    # Numerically stable log-softmax pieces (one exp over the dense block).
    m = jnp.max(logits, axis=-1, keepdims=True)                 # (TN, 1)  XLU
    e = jnp.exp(logits - m)                                      # (TN, C)  EUP
    sumexp = jnp.sum(e, axis=-1, keepdims=True)                  # (TN, 1)  XLU

    # One-hot gather of the target logit (single (TN, C) XLU reduce).
    cls_ids = lax.broadcasted_iota(jnp.int32, logits.shape, 1)
    tgt_logit = jnp.sum(jnp.where(cls_ids == tgt, logits, 0.0),
                        axis=-1, keepdims=True)                  # (TN, 1)

    # ce = logsumexp - target_logit ; pt = exp(-ce)  (as in the PyTorch code).
    ce = jnp.maximum(m + jnp.log(sumexp) - tgt_logit, 0.0)       # clamp rounding
    pt = jnp.exp(-ce)                                            # per-row EUP exp
    one_minus_pt = 1.0 - pt                                      # in [0, 1]

    if gamma == 2.0:
        w = one_minus_pt * one_minus_pt                          # VPU square, not pow
    elif gamma == 1.0:
        w = one_minus_pt
    elif gamma == 0.0:
        w = jnp.ones_like(one_minus_pt)
    else:
        w = jnp.power(one_minus_pt, jnp.float32(gamma))

    focal = w * ce                                               # (TN, 1)

    if mask_rows:
        # Zero rows past the true N (padded last block) BEFORE reducing, so
        # garbage (even NaN) in out-of-bounds rows cannot leak into the sum.
        row = lax.broadcasted_iota(jnp.int32, (tile_n, 1), 0) + i * tile_n
        focal = jnp.where(row < n_valid, focal, 0.0)

    # One scalar partial sum per block, packed into a lane-dense (8, 128)
    # output tile: element [0, 0] carries the value, the rest are zeros, so
    # the wrapper-side jnp.sum over all partial tiles is exact.
    s = jnp.sum(focal)
    sub = lax.broadcasted_iota(jnp.int32, (8, 128), 0)
    lane = lax.broadcasted_iota(jnp.int32, (8, 128), 1)
    out_ref[...] = jnp.where((sub == 0) & (lane == 0), s, 0.0)[None, :, :]


def _pick_tile_n(n, c, target_block_bytes):
    rows = max(1, target_block_bytes // (c * 4))
    rows = min(rows, _round_up(n, 8))
    return _round_up(max(rows, 8), 8)


def focal_loss(predictions, target, *, gamma=2.0, tile_n=None,
               target_block_bytes=4 << 20):
    """predictions: (N, C) float logits; target: (N,) int class indices."""
    N, C = predictions.shape
    gamma = float(gamma)
    if tile_n is None:
        tile_n = _pick_tile_n(N, C, target_block_bytes)
    assert tile_n % 8 == 0, "tile_n must be a multiple of 8 (sublane tiling)"

    num_blocks = pl.cdiv(N, tile_n)
    tgt2d = target.astype(jnp.int32).reshape(N, 1)

    kernel = functools.partial(
        _focal_loss_kernel, gamma=gamma, n_valid=N, tile_n=tile_n,
        mask_rows=(num_blocks * tile_n != N))

    # TODO(synk): for C < 128 a lane-dense repack (N, C) -> (N/k, k*C) would
    # recover full 128-lane vreg occupancy; skipped here for clarity.
    partials = pl.pallas_call(
        kernel,
        out_shape=jax.ShapeDtypeStruct((num_blocks, 8, 128), jnp.float32),
        grid_spec=pltpu.PrefetchScalarGridSpec(
            num_scalar_prefetch=0,
            grid=(num_blocks,),
            in_specs=[
                pl.BlockSpec((tile_n, C), lambda i: (i, 0)),
                pl.BlockSpec((tile_n, 1), lambda i: (i, 0)),
            ],
            out_specs=pl.BlockSpec((1, 8, 128), lambda i: (i, 0, 0)),
        ),
        compiler_params=pltpu.CompilerParams(
            # Every block is independent -> shardable across both v7x cores.
            dimension_semantics=("parallel",),
            vmem_limit_bytes=48 * 1024 * 1024,
        ),
    )(predictions, tgt2d)

    # Final mean: tiny f32 tree-reduction outside the kernel.
    return jnp.sum(partials) / jnp.float32(N)


def focal_loss_ref(predictions, target, gamma=2.0):
    """Pure-JAX reference mirroring F.cross_entropy + focal weighting."""
    logp = jax.nn.log_softmax(predictions.astype(jnp.float32), axis=-1)
    ce = -jnp.take_along_axis(logp, target[:, None].astype(jnp.int32), axis=-1)[:, 0]
    pt = jnp.exp(-ce)
    return jnp.mean((1.0 - pt) ** gamma * ce)


if __name__ == "__main__":
    N, C = 200, 32
    key = jax.random.PRNGKey(0)
    k1, k2 = jax.random.split(key)
    predictions = jax.random.normal(k1, (N, C), dtype=jnp.float32)
    target = jax.random.randint(k2, (N,), 0, C, dtype=jnp.int32)

    ref = focal_loss_ref(predictions, target, gamma=2.0)

    # Auto-sized tile (single padded block).
    loss_auto = jax.block_until_ready(focal_loss(predictions, target, gamma=2.0))
    # Small explicit tile -> multi-block grid with a partial (masked) last block.
    loss_tiled = jax.block_until_ready(
        focal_loss(predictions, target, gamma=2.0, tile_n=64))

    assert jnp.allclose(loss_auto, ref, rtol=1e-3, atol=1e-3), (loss_auto, ref)
    assert jnp.allclose(loss_tiled, ref, rtol=1e-3, atol=1e-3), (loss_tiled, ref)

    print("KERNEL_OK")
</pallas_src>

<mosaic_0001>
module attributes {stable_mosaic.version = 11 : i64} {
  func.func @_focal_loss_kernel(%arg0: i32, %arg1: memref<200x32xf32, #tpu.memory_space<vmem>>, %arg2: memref<200x1xi32, #tpu.memory_space<vmem>>, %arg3: memref<1x8x128xf32, #tpu.memory_space<vmem>>) attributes {dimension_semantics = [#tpu.dimension_semantics<parallel>], iteration_bounds = array<i64: 1>, scalar_prefetch = 0 : i64, scratch_operands = 0 : i64, tpu.core_type = #tpu.core_type<tc>, window_params = [{transform_indices = @transform_0, window_bounds = array<i64: 200, 32>}, {transform_indices = @transform_1, window_bounds = array<i64: 200, 1>}, {transform_indices = @transform_2, window_bounds = array<i64: 1, 8, 128>}]} {
    %c0 = arith.constant 0 : index
    %c0_0 = arith.constant 0 : index
    %0 = vector.load %arg1[%c0, %c0_0] : memref<200x32xf32, #tpu.memory_space<vmem>>, vector<200x32xf32>
    %c0_1 = arith.constant 0 : index
    %c0_2 = arith.constant 0 : index
    %1 = vector.load %arg2[%c0_1, %c0_2] : memref<200x1xi32, #tpu.memory_space<vmem>>, vector<200x1xi32>
    %cst = arith.constant dense<0xFF800000> : vector<200xf32>
    %2 = vector.multi_reduction <maximumf>, %0, %cst [1] : vector<200x32xf32> to vector<200xf32>
    %3 = vector.shape_cast %2 : vector<200xf32> to vector<200x1xf32>
    %4 = vector.broadcast %3 : vector<200x1xf32> to vector<200x32xf32>
    %5 = arith.subf %0, %4 : vector<200x32xf32>
    %6 = math.exp %5 : vector<200x32xf32>
    %cst_3 = arith.constant dense<0.000000e+00> : vector<200xf32>
    %7 = vector.multi_reduction <add>, %6, %cst_3 [1] : vector<200x32xf32> to vector<200xf32>
    %8 = vector.shape_cast %7 : vector<200xf32> to vector<200x1xf32>
    %9 = tpu.iota {dimensions = array<i32: 1>} : vector<200x32xi32>
    %10 = vector.broadcast %1 : vector<200x1xi32> to vector<200x32xi32>
    %11 = arith.cmpi eq, %9, %10 : vector<200x32xi32>
    %cst_4 = arith.constant 0.000000e+00 : f32
    %12 = vector.broadcast %cst_4 : f32 to vector<200x32xf32>
    %13 = arith.select %11, %0, %12 : vector<200x32xi1>, vector<200x32xf32>
    %cst_5 = arith.constant dense<0.000000e+00> : vector<200xf32>
    %14 = vector.multi_reduction <add>, %13, %cst_5 [1] : vector<200x32xf32> to vector<200xf32>
    %15 = vector.shape_cast %14 : vector<200xf32> to vector<200x1xf32>
    %16 = math.log %8 : vector<200x1xf32>
    %17 = arith.addf %3, %16 : vector<200x1xf32>
    %18 = arith.subf %17, %15 : vector<200x1xf32>
    %cst_6 = arith.constant 0.000000e+00 : f32
    %19 = vector.broadcast %cst_6 : f32 to vector<200x1xf32>
    %20 = arith.maximumf %18, %19 : vector<200x1xf32>
    %cst_7 = arith.constant 0.000000e+00 : f32
    %21 = vector.broadcast %cst_7 : f32 to vector<200x1xf32>
    %22 = arith.subf %21, %20 : vector<200x1xf32>
    %23 = math.exp %22 : vector<200x1xf32>
    %cst_8 = arith.constant 1.000000e+00 : f32
    %24 = vector.broadcast %cst_8 : f32 to vector<200x1xf32>
    %25 = arith.subf %24, %23 : vector<200x1xf32>
    %26 = arith.mulf %25, %25 : vector<200x1xf32>
    %27 = arith.mulf %26, %20 : vector<200x1xf32>
    %28 = vector.shape_cast %27 : vector<200x1xf32> to vector<1x200x1xf32>
    %cst_9 = arith.constant dense<0.000000e+00> : vector<1xf32>
    %29 = vector.multi_reduction <add>, %28, %cst_9 [1, 2] : vector<1x200x1xf32> to vector<1xf32>
    %30 = vector.shape_cast %29 : vector<1xf32> to vector<1x1x1xf32>
    %31 = vector.extract %30[0, 0, 0] : f32 from vector<1x1x1xf32>
    %32 = tpu.iota {dimensions = array<i32: 0>} : vector<8x128xi32>
    %33 = tpu.iota {dimensions = array<i32: 1>} : vector<8x128xi32>
    %c0_i32 = arith.constant 0 : i32
    %34 = vector.broadcast %c0_i32 : i32 to vector<8x128xi32>
    %35 = arith.cmpi eq, %32, %34 : vector<8x128xi32>
    %c0_i32_10 = arith.constant 0 : i32
    %36 = vector.broadcast %c0_i32_10 : i32 to vector<8x128xi32>
    %37 = arith.cmpi eq, %33, %36 : vector<8x128xi32>
    %38 = arith.andi %35, %37 : vector<8x128xi1>
    %cst_11 = arith.constant 0.000000e+00 : f32
    %39 = vector.broadcast %31 : f32 to vector<8x128xf32>
    %40 = vector.broadcast %cst_11 : f32 to vector<8x128xf32>
    %41 = arith.select %38, %39, %40 : vector<8x128xi1>, vector<8x128xf32>
    %42 = vector.shape_cast %41 : vector<8x128xf32> to vector<1x8x128xf32>
    %c0_12 = arith.constant 0 : index
    %c0_13 = arith.constant 0 : index
    %c0_14 = arith.constant 0 : index
    %43 = vector.load %arg3[%c0_12, %c0_13, %c0_14] : memref<1x8x128xf32, #tpu.memory_space<vmem>>, vector<1x8x128xf32>
    tpu.vector_store %arg3[%c0_12, %c0_13, %c0_14], %42 {strides = array<i32>} : memref<1x8x128xf32, #tpu.memory_space<vmem>>, vector<1x8x128xf32>,
    return
  }
  func.func @transform_0(%arg0: i32) -> (i32, i32) {
    %c0_i32 = arith.constant 0 : i32
    %c0_i32_0 = arith.constant 0 : i32
    return %arg0, %c0_i32 : i32, i32
  }
  func.func @transform_1(%arg0: i32) -> (i32, i32) {
    %c0_i32 = arith.constant 0 : i32
    %c0_i32_0 = arith.constant 0 : i32
    return %arg0, %c0_i32 : i32, i32
  }
  func.func @transform_2(%arg0: i32) -> (i32, i32, i32) {
    %c0_i32 = arith.constant 0 : i32
    %c0_i32_0 = arith.constant 0 : i32
    %c0_i32_1 = arith.constant 0 : i32
    return %arg0, %c0_i32, %c0_i32_0 : i32, i32, i32
  }
}

</mosaic_0001>

<bundles_post_ra>
// kernel: tpu_custom_call.1
= control target key start
LH: loop header
LB: loop body
LE: loop exit
PB: predicated region body
PF: predicated region fallthrough
CT: control target
= control target key end

     0   :  { %vm62_vm0 = vcmask 261120   ;;  %s1696_s0 = inlined_call_operand.vmem [shape: f32[200,32], index: 0, kind: input, shape index: {}]   ;;  %s1697_s1 = inlined_call_operand.vmem [shape: s32[200,1], index: 1, kind: input, shape index: {}]   ;;  %s1698_s2 = inlined_call_operand.hbm [shape: f32[1,8,128], index: 2, kind: output, shape index: {}]  }
   0x1   :  { %v1051_v0 = vld [vmem:[%s1696_s0 + $0x20] sm:$0xff]  ;;  %v1056_v1 = vld [vmem:[%s1696_s0 + $0x10] sm:$0xff]  ;;  %v1072_v6 = vld [vmem:[%s1696_s0 + $0x28] sm:$0xff] }
   0x2   :  { %v1061_v2 = vld [vmem:[%s1696_s0] sm:$0xff]  ;;  %v75_v3 = vsel %vm62_vm0, %v1051_v0, -inf  ;;  %v69_v4 = vsel %vm62_vm0, %v1056_v1, -inf  ;;  %v1077_v7 = vld [vmem:[%s1696_s0 + $0x18] sm:$0xff]  ;;  %v1082_v8 = vld [vmem:[%s1696_s0 + $0x8] sm:$0xff] }
   0x3   :  { %v63_v5 = vsel %vm62_vm0, %v1061_v2, -inf  ;;  %76 = vmax.xlane.f32.xlu2 %v75_v3  ;;  %70 = vmax.xlane.f32.xlu1 %v69_v4 }
   0x4   :  { %64 = vmax.xlane.f32.xlu0 %v63_v5 }
   0x5   :  { %7 = vsyncpa [#allocation3], 0  ;;  %v78_v9 = vsel %vm62_vm0, %v1072_v6, -inf  ;;  %v72_v10 = vsel %vm62_vm0, %v1077_v7, -inf  ;;  %v66_v11 = vsel %vm62_vm0, %v1082_v8, -inf  ;;  %v1093_v12 = vld [vmem:[%s1696_s0 + $0x40] sm:$0xff] }
   0x6   :  { %v1098_v13 = vld [vmem:[%s1696_s0 + $0x38] sm:$0xff]  ;;  %v1103_v14 = vld [vmem:[%s1696_s0 + $0x30] sm:$0xff]  ;;  %v87_v15 = vsel %vm62_vm0, %v1093_v12, -inf  ;;  %v1124_v20 = vld [vmem:[%s1696_s0 + $0x48] sm:$0xff]  ;;  %vm765_vm10 = vcmask 7168   ;;  %s839_s26 = sshll.u32 %s1698_s2, 4  ;;  %s840_s26 = int_to_ptr.hbm [resolvable:$true] %s839_s26 }
   0x7   :  { %v84_v16 = vsel %vm62_vm0, %v1098_v13, -inf  ;;  %v81_v17 = vsel %vm62_vm0, %v1103_v14, -inf  ;;  %v1114_v18 = vld [vmem:[%s1696_s0 + $0x58] sm:$0xff]  ;;  %v1119_v19 = vld [vmem:[%s1696_s0 + $0x50] sm:$0xff]  ;;  %v90_v23 = vsel %vm62_vm0, %v1124_v20, -inf  ;;  %v1140_v25 = vld [vmem:[%s1696_s0 + $0x68] sm:$0xff] }
   0x8   :  { %v96_v21 = vsel %vm62_vm0, %v1114_v18, -inf  ;;  %v93_v22 = vsel %vm62_vm0, %v1119_v19, -inf  ;;  %v1135_v24 = vld [vmem:[%s1696_s0 + $0x70] sm:$0xff]  ;;  %v1145_v26 = vld [vmem:[%s1696_s0 + $0x60] sm:$0xff]  ;;  %v102_v28 = vsel %vm62_vm0, %v1140_v25, -inf  ;;  %v1156_v30 = vld [vmem:[%s1696_s0 + $0x88] sm:$0xff] }
   0x9   :  { %v105_v27 = vsel %vm62_vm0, %v1135_v24, -inf  ;;  %v99_v29 = vsel %vm62_vm0, %v1145_v26, -inf  ;;  %v1161_v31 = vld [vmem:[%s1696_s0 + $0x80] sm:$0xff]  ;;  %v1166_v32 = vld [vmem:[%s1696_s0 + $0x78] sm:$0xff]  ;;  %v114_v33 = vsel %vm62_vm0, %v1156_v30, -inf  ;;  %v1187_v38 = vld [vmem:[%s1696_s0 + $0x90] sm:$0xff] }
   0xa   :  { %v111_v34 = vsel %vm62_vm0, %v1161_v31, -inf  ;;  %v108_v35 = vsel %vm62_vm0, %v1166_v32, -inf  ;;  %v1177_v36 = vld [vmem:[%s1696_s0 + $0xa0] sm:$0xff]  ;;  %v1182_v37 = vld [vmem:[%s1696_s0 + $0x98] sm:$0xff]  ;;  %v117_v41 = vsel %vm62_vm0, %v1187_v38, -inf  ;;  %v1198_v42 = vld [vmem:[%s1696_s0 + $0xa8] sm:$0xff] }
   0xb   :  { %79 = vmax.xlane.f32.xlu2 %v78_v9  ;;  %73 = vmax.xlane.f32.xlu1 %v72_v10  ;;  %v123_v39 = vsel %vm62_vm0, %v1177_v36, -inf  ;;  %v120_v40 = vsel %vm62_vm0, %v1182_v37, -inf  ;;  %v126_v43 = vsel %vm62_vm0, %v1198_v42, -inf  ;;  %v1205_v44 = vld [vmem:[%s1696_s0 + $0xb0] sm:$0xff]  ;;  %v1210_v45 = vld [vmem:[%s1696_s0 + $0xc0] sm:$0xff]  ;;  %v1219_v48 = vld [vmem:[%s1696_s0 + $0xb8] sm:$0xff] }
   0xc   :  { %67 = vmax.xlane.f32.xlu0 %v66_v11  ;;  %v129_v46 = vsel %vm62_vm0, %v1205_v44, -inf  ;;  %v135_v47 = vsel %vm62_vm0, %v1210_v45, -inf  ;;  %v132_v49 = vsel %vm62_vm0, %v1219_v48, -inf }
  0x13   :  { %88 = vmax.xlane.f32.xlu2 %v87_v15  ;;  %85 = vmax.xlane.f32.xlu1 %v84_v16 }
  0x14   :  { %82 = vmax.xlane.f32.xlu0 %v81_v17 }
  0x1b   :  { %97 = vmax.xlane.f32.xlu2 %v96_v21  ;;  %94 = vmax.xlane.f32.xlu1 %v93_v22 }
  0x1c   :  { %91 = vmax.xlane.f32.xlu0 %v90_v23 }
  0x23   :  { %106 = vmax.xlane.f32.xlu2 %v105_v27  ;;  %103 = vmax.xlane.f32.xlu1 %v102_v28 }
  0x24   :  { %100 = vmax.xlane.f32.xlu0 %v99_v29 }
  0x2b   :  { %115 = vmax.xlane.f32.xlu2 %v114_v33  ;;  %112 = vmax.xlane.f32.xlu1 %v111_v34 }
  0x2c   :  { %109 = vmax.xlane.f32.xlu0 %v108_v35 }
  0x33   :  { %124 = vmax.xlane.f32.xlu2 %v123_v39  ;;  %121 = vmax.xlane.f32.xlu1 %v120_v40 }
  0x34   :  { %118 = vmax.xlane.f32.xlu0 %v117_v41 }
  0x3b   :  { %130 = vmax.xlane.f32.xlu1 %v129_v46  ;;  %133 = vmax.xlane.f32.xlu2 %v132_v49 }
  0x3c   :  { %127 = vmax.xlane.f32.xlu0 %v126_v43 }
  0x44   :  { %136 = vmax.xlane.f32.xlu0 %v135_v47 }
  0x76   :  { %v1223_v50 = vpop.xlane.xlu2 %76  ;;  %v1225_v51 = vpop.xlane.xlu1 %70 }
  0x77   :  { %v140_v52 = vsub.f32 %v1056_v1, %v1225_v51  ;;  %v1229_v53 = vpop.xlane.xlu0 %64  ;;  %v142_v5 = vsub.f32 %v1051_v0, %v1223_v50 }
  0x78   :  { %v138_v54 = vsub.f32 %v1061_v2, %v1229_v53 }
  0x79   :  { %v167_v55 = vmul.f32 1.442695, %v140_v52  ;;  %v171_v16 = vmul.f32 1.442695, %v142_v5 }
  0x7a   :  { %v163_v56 = vmul.f32 1.442695, %v138_v54 }
  0x7b   :  { %855 = vpow2.f32 %v167_v55 }
  0x7c   :  { %857 = vpow2.f32 %v163_v56 }
  0x7e   :  { %v1233_v57 = vpop.xlane.xlu2 %79  ;;  %v1235_v58 = vpop.xlane.xlu1 %73 }
  0x7f   :  { %v143_v59 = vsub.f32 %v1072_v6, %v1233_v57  ;;  %v141_v60 = vsub.f32 %v1077_v7, %v1235_v58  ;;  %v1241_v61 = vpop.xlane.xlu0 %67 }
  0x80   :  { %v139_v62 = vsub.f32 %v1082_v8, %v1241_v61 }
  0x81   :  { %v173_v63 = vmul.f32 1.442695, %v143_v59  ;;  %v169_v3 = vmul.f32 1.442695, %v141_v60  ;;  %v856_v4 = vpop.eup %855 }
  0x82   :  { %v165_v9 = vmul.f32 1.442695, %v139_v62  ;;  %v858_v10 = vpop.eup %857  ;;  %v219_v11 = vsel %vm62_vm0, %v856_v4, 0.0 }
  0x83   :  { %859 = vpow2.f32 %v173_v63  ;;  %220 = vadd.xlane.f32.xlu0 %v219_v11  ;;  %v213_v15 = vsel %vm62_vm0, %v858_v10, 0.0 }
  0x84   :  { %861 = vpow2.f32 %v169_v3  ;;  %214 = vadd.xlane.f32.xlu1 %v213_v15 }
  0x85   :  { %863 = vpow2.f32 %v165_v9 }
  0x86   :  { %v1249_v17 = vpop.xlane.xlu2 %88  ;;  %v1251_v21 = vpop.xlane.xlu1 %85  ;;  %865 = vpow2.f32 %v171_v16 }
  0x87   :  { %v146_v22 = vsub.f32 %v1093_v12, %v1249_v17  ;;  %v1255_v23 = vpop.xlane.xlu0 %82  ;;  %v145_v33 = vsub.f32 %v1098_v13, %v1251_v21 }
  0x88   :  { %1714 = vst [vmem:[#allocation5_spill] sm:$0xff] %v1255_v23  ;;  %v144_v27 = vsub.f32 %v1103_v14, %v1255_v23 }
  0x89   :  { %v860_v28 = vpop.eup %859  ;;  %v179_v29 = vmul.f32 1.442695, %v146_v22  ;;  %v177_v46 = vmul.f32 1.442695, %v145_v33 }
  0x8a   :  { %v862_v34 = vpop.eup %861  ;;  %v175_v35 = vmul.f32 1.442695, %v144_v27  ;;  %v228_v39 = vsel %vm62_vm0, %v860_v28, 0.0 }
  0x8b   :  { %v864_v40 = vpop.eup %863  ;;  %867 = vpow2.f32 %v179_v29  ;;  %v222_v41 = vsel %vm62_vm0, %v862_v34, 0.0  ;;  %229 = vadd.xlane.f32.xlu0 %v228_v39 }
  0x8c   :  { %869 = vpow2.f32 %v175_v35  ;;  %v216_v43 = vsel %vm62_vm0, %v864_v40, 0.0  ;;  %223 = vadd.xlane.f32.xlu1 %v222_v41  ;;  %v866_v55 = vpop.eup %865 }
  0x8d   :  { %217 = vadd.xlane.f32.xlu2 %v216_v43  ;;  %871 = vpow2.f32 %v177_v46  ;;  %v225_v9 = vsel %vm62_vm0, %v866_v55, 0.0 }
  0x8e   :  { %v1264_v47 = vpop.xlane.xlu2 %97  ;;  %v1266_v49 = vpop.xlane.xlu1 %94 }
  0x8f   :  { %1715 = vst [vmem:[#allocation6_spill] sm:$0xff] %v1264_v47  ;;  %v149_v52 = vsub.f32 %v1114_v18, %v1264_v47  ;;  %v1270_v54 = vpop.xlane.xlu0 %91  ;;  %v148_v62 = vsub.f32 %v1119_v19, %v1266_v49 }
  0x90   :  { %1716 = vst [vmem:[#allocation7_spill] sm:$0xff] %v1266_v49  ;;  %v147_v56 = vsub.f32 %v1124_v20, %v1270_v54 }
  0x91   :  { %1717 = vst [vmem:[#allocation8_spill] sm:$0xff] %v1270_v54  ;;  %v868_v59 = vpop.eup %867  ;;  %v185_v60 = vmul.f32 1.442695, %v149_v52  ;;  %v183_v10 = vmul.f32 1.442695, %v148_v62 }
  0x92   :  { %v870_v63 = vpop.eup %869  ;;  %v181_v3 = vmul.f32 1.442695, %v147_v56  ;;  %v237_v4 = vsel %vm62_vm0, %v868_v59, 0.0  ;;  %v1031_v56 = vmov 0  }
  0x93   :  { %873 = vpow2.f32 %v185_v60  ;;  %v231_v5 = vsel %vm62_vm0, %v870_v63, 0.0  ;;  %238 = vadd.xlane.f32.xlu0 %v237_v4  ;;  %v872_v16 = vpop.eup %871  ;;  %854 = vset.pattern.permute.xlu1 %v1031_v56 }
  0x94   :  { %875 = vpow2.f32 %v181_v3  ;;  %232 = vadd.xlane.f32.xlu1 %v231_v5  ;;  %v234_v41 = vsel %vm62_vm0, %v872_v16, 0.0  ;;  %853 = vset.pattern.permute.xlu0 %v1031_v56 }
  0x95   :  { %226 = vadd.xlane.f32.xlu2 %v225_v9  ;;  %877 = vpow2.f32 %v183_v10 }
  0x96   :  { %v1279_v11 = vpop.xlane.xlu2 %106  ;;  %v1281_v15 = vpop.xlane.xlu1 %103  ;;  %852 = vset.pattern.permute.xlu2 %v1031_v56 }
  0x97   :  { %1718 = vst [vmem:[#allocation9_spill] sm:$0xff] %v1279_v11  ;;  %v152_v22 = vsub.f32 %v1135_v24, %v1279_v11  ;;  %v1285_v27 = vpop.xlane.xlu0 %100  ;;  %v151_v34 = vsub.f32 %v1140_v25, %v1281_v15 }
  0x98   :  { %1719 = vst [vmem:[#allocation10_spill] sm:$0xff] %v1281_v15  ;;  %v150_v28 = vsub.f32 %v1145_v26, %v1285_v27 }
  0x99   :  { %1720 = vst [vmem:[#allocation11_spill] sm:$0xff] %v1285_v27  ;;  %v874_v29 = vpop.eup %873  ;;  %v191_v33 = vmul.f32 1.442695, %v152_v22  ;;  %v189_v46 = vmul.f32 1.442695, %v151_v34 }
  0x9a   :  { %v876_v35 = vpop.eup %875  ;;  %v187_v39 = vmul.f32 1.442695, %v150_v28  ;;  %v246_v40 = vsel %vm62_vm0, %v874_v29, 0.0 }
  0x9b   :  { %879 = vpow2.f32 %v191_v33  ;;  %v240_v43 = vsel %vm62_vm0, %v876_v35, 0.0  ;;  %247 = vadd.xlane.f32.xlu0 %v246_v40  ;;  %v878_v59 = vpop.eup %877 }
  0x9c   :  { %881 = vpow2.f32 %v187_v39  ;;  %241 = vadd.xlane.f32.xlu1 %v240_v43  ;;  %v243_v22 = vsel %vm62_vm0, %v878_v59, 0.0 }
  0x9d   :  { %235 = vadd.xlane.f32.xlu2 %v234_v41  ;;  %883 = vpow2.f32 %v189_v46 }
  0x9e   :  { %v1294_v52 = vpop.xlane.xlu2 %115  ;;  %v1296_v55 = vpop.xlane.xlu1 %112 }
  0x9f   :  { %1721 = vst [vmem:[#allocation12_spill] sm:$0xff] %v1294_v52  ;;  %v155_v60 = vsub.f32 %v1156_v30, %v1294_v52  ;;  %v1300_v62 = vpop.xlane.xlu0 %109  ;;  %v154_v5 = vsub.f32 %v1161_v31, %v1296_v55 }
  0xa0   :  { %1722 = vst [vmem:[#allocation13_spill] sm:$0xff] %v1296_v55  ;;  %v153_v63 = vsub.f32 %v1166_v32, %v1300_v62 }
  0xa1   :  { %1723 = vst [vmem:[#allocation14_spill] sm:$0xff] %v1300_v62  ;;  %v880_v3 = vpop.eup %879  ;;  %v197_v4 = vmul.f32 1.442695, %v155_v60  ;;  %v195_v29 = vmul.f32 1.442695, %v154_v5 }
  0xa2   :  { %v882_v9 = vpop.eup %881  ;;  %v193_v10 = vmul.f32 1.442695, %v153_v63  ;;  %v255_v16 = vsel %vm62_vm0, %v880_v3, 0.0 }
  0xa3   :  { %885 = vpow2.f32 %v197_v4  ;;  %v249_v28 = vsel %vm62_vm0, %v882_v9, 0.0  ;;  %256 = vadd.xlane.f32.xlu0 %v255_v16  ;;  %v884_v35 = vpop.eup %883 }
  0xa4   :  { %887 = vpow2.f32 %v193_v10  ;;  %250 = vadd.xlane.f32.xlu1 %v249_v28  ;;  %v252_v3 = vsel %vm62_vm0, %v884_v35, 0.0 }
  0xa5   :  { %244 = vadd.xlane.f32.xlu2 %v243_v22  ;;  %889 = vpow2.f32 %v195_v29 }
  0xa6   :  { %v1309_v33 = vpop.xlane.xlu2 %124  ;;  %v1311_v34 = vpop.xlane.xlu1 %121 }
  0xa7   :  { %1724 = vst [vmem:[#allocation15_spill] sm:$0xff] %v1309_v33  ;;  %v158_v39 = vsub.f32 %v1177_v36, %v1309_v33  ;;  %v1315_v40 = vpop.xlane.xlu0 %118  ;;  %v157_v56 = vsub.f32 %v1182_v37, %v1311_v34 }
  0xa8   :  { %1725 = vst [vmem:[#allocation16_spill] sm:$0xff] %v1311_v34  ;;  %v156_v41 = vsub.f32 %v1187_v38, %v1315_v40 }
  0xa9   :  { %1726 = vst [vmem:[#allocation17_spill] sm:$0xff] %v1315_v40  ;;  %v886_v43 = vpop.eup %885  ;;  %v203_v46 = vmul.f32 1.442695, %v158_v39  ;;  %v201_v5 = vmul.f32 1.442695, %v157_v56  ;;  %v1710_v40 = vlaneseq }
  0xaa   :  { %v888_v59 = vpop.eup %887  ;;  %v199_v60 = vmul.f32 1.442695, %v156_v41  ;;  %v264_v63 = vsel %vm62_vm0, %v886_v43, 0.0 }
  0xab   :  { %891 = vpow2.f32 %v203_v46  ;;  %v258_v4 = vsel %vm62_vm0, %v888_v59, 0.0  ;;  %265 = vadd.xlane.f32.xlu0 %v264_v63  ;;  %v890_v9 = vpop.eup %889  ;;  %v45_v63 = vld [vmem:[%s1697_s1 + $0x40] sm:$0xff]  ;;  %v1428_v15 = vand.u32 127, %v1710_v40 }
  0xac   :  { %893 = vpow2.f32 %v199_v60  ;;  %259 = vadd.xlane.f32.xlu1 %v258_v4  ;;  %v261_v39 = vsel %vm62_vm0, %v890_v9, 0.0  ;;  %v38_v60 = vld [vmem:[%s1697_s1 + $0x8] sm:$0xff]  ;;  %v39_v4 = vld [vmem:[%s1697_s1 + $0x10] sm:$0xff] }
  0xad   :  { %253 = vadd.xlane.f32.xlu2 %v252_v3  ;;  %895 = vpow2.f32 %v201_v5  ;;  %v37_v3 = vld [vmem:[%s1697_s1] sm:$0xff]  ;;  %v48_v5 = vld [vmem:[%s1697_s1 + $0x58] sm:$0xff]  ;;  %v42_v9 = vld [vmem:[%s1697_s1 + $0x28] sm:$0xff] }
  0xaf   :  { %v1324_v10 = vpop.xlane.xlu0 %127 }
  0xb0   :  { %1727 = vst [vmem:[#allocation18_spill] sm:$0xff] %v1324_v10  ;;  %v159_v16 = vsub.f32 %v1198_v42, %v1324_v10 }
  0xb1   :  { %v892_v22 = vpop.eup %891 }
  0xb2   :  { %v894_v28 = vpop.eup %893  ;;  %v205_v29 = vmul.f32 1.442695, %v159_v16  ;;  %v273_v35 = vsel %vm62_vm0, %v892_v22, 0.0  ;;  %v51_v16 = vld [vmem:[%s1697_s1 + $0x70] sm:$0xff]  ;;  %v44_v22 = vld [vmem:[%s1697_s1 + $0x38] sm:$0xff] }
  0xb3   :  { %v267_v41 = vsel %vm62_vm0, %v894_v28, 0.0  ;;  %274 = vadd.xlane.f32.xlu0 %v273_v35  ;;  %v896_v43 = vpop.eup %895  ;;  %v54_v28 = vld [vmem:[%s1697_s1 + $0x88] sm:$0xff] }
  0xb4   :  { %897 = vpow2.f32 %v205_v29  ;;  %268 = vadd.xlane.f32.xlu1 %v267_v41  ;;  %v270_v56 = vsel %vm62_vm0, %v896_v43, 0.0  ;;  %v47_v29 = vld [vmem:[%s1697_s1 + $0x50] sm:$0xff]  ;;  %v1368_v41 = vpop.xlane.xlu1 %130  ;;  %v50_v43 = vld [vmem:[%s1697_s1 + $0x68] sm:$0xff] }
  0xb5   :  { %262 = vadd.xlane.f32.xlu2 %v261_v39  ;;  %v57_v39 = vld [vmem:[%s1697_s1 + $0xa0] sm:$0xff] }
  0xb7   :  { %v1363_v35 = vpop.xlane.xlu0 %136 }
  0xba   :  { %v898_v46 = vpop.eup %897 }
  0xbb   :  { %v276_v59 = vsel %vm62_vm0, %v898_v46, 0.0  ;;  %v1373_v46 = vpop.xlane.xlu2 %133 }
  0xbc   :  { %277 = vadd.xlane.f32.xlu1 %v276_v59 }
  0xbd   :  { %271 = vadd.xlane.f32.xlu2 %v270_v56 }
  0xc7   :  { %294 = vperm.xlu0 %853, %v38_v60   ;;  %v53_v60 = vld [vmem:[%s1697_s1 + $0x80] sm:$0xff] }
  0xcf   :  { %315 = vperm.xlu0 %853, %v45_v63  }
  0xd5   :  { %291 = vperm.xlu2 %852, %v37_v3   ;;  %297 = vperm.xlu1 %854, %v39_v4   ;;  %v56_v4 = vld [vmem:[%s1697_s1 + $0x98] sm:$0xff] }
  0xd7   :  { %324 = vperm.xlu0 %853, %v48_v5  }
  0xdd   :  { %306 = vperm.xlu1 %854, %v42_v9  }
  0xdf   :  { %333 = vperm.xlu0 %853, %v51_v16  }
  0xe5   :  { %312 = vperm.xlu1 %854, %v44_v22   ;;  %v59_v22 = vld [vmem:[%s1697_s1 + $0xb0] sm:$0xff] }
  0xe7   :  { %342 = vperm.xlu0 %853, %v54_v28  }
  0xed   :  { %321 = vperm.xlu1 %854, %v47_v29  }
  0xef   :  { %351 = vperm.xlu0 %853, %v57_v39   ;;  %v60_v39 = vld [vmem:[%s1697_s1 + $0xb8] sm:$0xff] }
  0xf5   :  { %330 = vperm.xlu1 %854, %v50_v43  }
  0xf6   :  { %v1375_v56 = vpop.xlane.xlu0 %220 }
  0xf7   :  { %v1377_v59 = vpop.xlane.xlu1 %214 }
  0xf8   :  { %899 = vlog2.f32 %v1377_v59 }
  0xfd   :  { %339 = vperm.xlu1 %854, %v53_v60  }
  0xfe   :  { %v1384_v3 = vpop.xlane.xlu0 %229 }
  0xff   :  { %v1389_v5 = vpop.xlane.xlu1 %223 }
 0x100   :  { %v1382_v63 = vpop.xlane.xlu2 %217 }
 0x101   :  { %901 = vlog2.f32 %v1382_v63 }
 0x102   :  { %903 = vlog2.f32 %v1375_v56 }
 0x105   :  { %348 = vperm.xlu1 %854, %v56_v4  }
 0x106   :  { %v1393_v16 = vpop.xlane.xlu0 %238 }
 0x107   :  { %v1398_v28 = vpop.xlane.xlu1 %232 }
 0x108   :  { %v1391_v9 = vpop.xlane.xlu2 %226 }
 0x10d   :  { %357 = vperm.xlu1 %854, %v59_v22  }
 0x10e   :  { %v1405_v43 = vpop.xlane.xlu0 %247 }
 0x10f   :  { %1728 = vst [vmem:[#allocation19_spill] sm:$0xff] %v1405_v43  ;;  %v1407_v60 = vpop.xlane.xlu1 %241 }
 0x110   :  { %v1400_v29 = vpop.xlane.xlu2 %235  ;;  %1729 = vst [vmem:[#allocation20_spill] sm:$0xff] %v1407_v60 }
 0x115   :  { %360 = vperm.xlu1 %854, %v60_v39  }
 0x116   :  { %v1411_v10 = vpop.xlane.xlu0 %256 }
 0x117   :  { %1730 = vst [vmem:[#allocation21_spill] sm:$0xff] %v1411_v10  ;;  %v1415_v33 = vpop.xlane.xlu1 %250 }
 0x118   :  { %v1409_v4 = vpop.xlane.xlu2 %244  ;;  %1732 = vst [vmem:[#allocation23_spill] sm:$0xff] %v1415_v33 }
 0x11e   :  { %v1417_v22 = vpop.xlane.xlu0 %265 }
 0x11f   :  { %1733 = vst [vmem:[#allocation24_spill] sm:$0xff] %v1417_v22  ;;  %v1421_v62 = vpop.xlane.xlu1 %259 }
 0x120   :  { %v1413_v34 = vpop.xlane.xlu2 %253  ;;  %1735 = vst [vmem:[#allocation26_spill] sm:$0xff] %v1421_v62 }
 0x121   :  { %1731 = vst [vmem:[#allocation22_spill] sm:$0xff] %v1413_v34 }
 0x126   :  { %v1425_v39 = vpop.xlane.xlu0 %274 }
 0x127   :  { %1737 = vst [vmem:[#allocation28_spill] sm:$0xff] %v1425_v39  ;;  %v1430_v11 = vpop.xlane.xlu1 %268 }
 0x128   :  { %v1419_v52 = vpop.xlane.xlu2 %262  ;;  %1738 = vst [vmem:[#allocation29_spill] sm:$0xff] %v1430_v11 }
 0x129   :  { %1734 = vst [vmem:[#allocation25_spill] sm:$0xff] %v1419_v52 }
 0x12f   :  { %v1438_v40 = vpop.xlane.xlu1 %277 }
 0x130   :  { %v1423_v55 = vpop.xlane.xlu2 %271  ;;  %1739 = vst [vmem:[#allocation30_spill] sm:$0xff] %v1438_v40 }
 0x131   :  { %1736 = vst [vmem:[#allocation27_spill] sm:$0xff] %v1423_v55 }
 0x138   :  { %v292_v47 = vpop.permute.xlu2 %291 }
 0x139   :  { %vm365_vm1 = vcmp.eq.s32.totalorder %v1428_v15, %v292_v47  ;;  %v295_v27 = vpop.permute.xlu0 %294 }
 0x13a   :  { %v390_v22 = vsel %vm365_vm1, %v1061_v2, 0.0  ;;  %vm366_vm2 = vcmp.eq.s32.totalorder %v1428_v15, %v295_v27 }
 0x13b   :  { %v415_v52 = vsel %vm62_vm0, %v390_v22, 0.0  ;;  %v391_v55 = vsel %vm366_vm2, %v1082_v8, 0.0 }
 0x13c   :  { %416 = vadd.xlane.f32.xlu0 %v415_v52  ;;  %v418_v39 = vsel %vm62_vm0, %v391_v55, 0.0  ;;  %v40_v52 = vld [vmem:[%s1697_s1 + $0x18] sm:$0xff] }
 0x13d   :  { %419 = vadd.xlane.f32.xlu2 %v418_v39 }
 0x147   :  { %v298_v62 = vpop.permute.xlu1 %297 }
 0x148   :  { %vm367_vm3 = vcmp.eq.s32.totalorder %v1428_v15, %v298_v62  ;;  %v41_v62 = vld [vmem:[%s1697_s1 + $0x20] sm:$0xff] }
 0x149   :  { %v392_v47 = vsel %vm367_vm3, %v1056_v1, 0.0 }
 0x14a   :  { %v421_v11 = vsel %vm62_vm0, %v392_v47, 0.0  ;;  %v43_v47 = vld [vmem:[%s1697_s1 + $0x30] sm:$0xff] }
 0x14b   :  { %422 = vadd.xlane.f32.xlu1 %v421_v11 }
 0x14f   :  { %v307_v2 = vpop.permute.xlu1 %306 }
 0x150   :  { %vm370_vm4 = vcmp.eq.s32.totalorder %v1428_v15, %v307_v2  ;;  %v49_v2 = vld [vmem:[%s1697_s1 + $0x60] sm:$0xff] }
 0x151   :  { %v395_v27 = vsel %vm370_vm4, %v1072_v6, 0.0 }
 0x152   :  { %v430_v8 = vsel %vm62_vm0, %v395_v27, 0.0  ;;  %v316_v27 = vpop.permute.xlu0 %315 }
 0x153   :  { %431 = vadd.xlane.f32.xlu1 %v430_v8  ;;  %v55_v8 = vld [vmem:[%s1697_s1 + $0x90] sm:$0xff]  ;;  %vm373_vm7 = vcmp.eq.s32.totalorder %v1428_v15, %v316_v27 }
 0x155   :  { %300 = vperm.xlu2 %852, %v40_v52  }
 0x157   :  { %v313_v55 = vpop.permute.xlu1 %312 }
 0x158   :  { %vm372_vm5 = vcmp.eq.s32.totalorder %v1428_v15, %v313_v55  ;;  %v58_v55 = vld [vmem:[%s1697_s1 + $0xa8] sm:$0xff] }
 0x159   :  { %v397_v1 = vsel %vm372_vm5, %v1098_v13, 0.0  ;;  %v46_v13 = vld [vmem:[%s1697_s1 + $0x48] sm:$0xff] }
 0x15a   :  { %v436_v11 = vsel %vm62_vm0, %v397_v1, 0.0  ;;  %v1473_v52 = vpop.permute.xlu0 %324 }
 0x15b   :  { %437 = vadd.xlane.f32.xlu1 %v436_v11  ;;  %vm376_vm13 = vcmp.eq.s32.totalorder %v1428_v15, %v1473_v52 }
 0x15d   :  { %303 = vperm.xlu2 %852, %v41_v62   ;;  %v61_v62 = vld [vmem:[%s1697_s1 + $0xc0] sm:$0xff] }
 0x15f   :  { %v322_v6 = vpop.permute.xlu1 %321 }
 0x160   :  { %vm375_vm6 = vcmp.eq.s32.totalorder %v1428_v15, %v322_v6 }
 0x161   :  { %v400_v22 = vsel %vm375_vm6, %v1119_v19, 0.0  ;;  %v52_v19 = vld [vmem:[%s1697_s1 + $0x78] sm:$0xff]  ;;  %s1032_s1 = smov [#allocation2]  }
 0x162   :  { %v445_v39 = vsel %vm62_vm0, %v400_v22, 0.0  ;;  %v1480_v11 = vpop.permute.xlu0 %333  ;;  %s837_s23 = sshll.u32 %s1032_s1, 4  ;;  %s838_s23 = int_to_ptr.vmem [resolvable:$true] %s837_s23 }
 0x163   :  { %446 = vadd.xlane.f32.xlu1 %v445_v39  ;;  %vm379_vm15 = vcmp.eq.s32.totalorder %v1428_v15, %v1480_v11 }
 0x165   :  { %309 = vperm.xlu2 %852, %v43_v47   ;;  %v900_v47 = vpop.eup %899 }
 0x167   :  { %v1478_v1 = vpop.permute.xlu1 %330 }
 0x168   :  { %vm378_vm1 = vcmp.eq.s32.totalorder %v1428_v15, %v1478_v1 }
 0x16a   :  { %v1487_v22 = vpop.permute.xlu0 %342 }
 0x16b   :  { %vm382_vm6 = vcmp.eq.s32.totalorder %v1428_v15, %v1487_v22 }
 0x16d   :  { %318 = vperm.xlu2 %852, %v46_v13  }
 0x16f   :  { %v1485_v6 = vpop.permute.xlu1 %339 }
 0x170   :  { %vm381_vm3 = vcmp.eq.s32.totalorder %v1428_v15, %v1485_v6 }
 0x172   :  { %v1493_v13 = vpop.permute.xlu0 %351 }
 0x173   :  { %vm385_vm5 = vcmp.eq.s32.totalorder %v1428_v15, %v1493_v13 }
 0x175   :  { %327 = vperm.xlu2 %852, %v49_v2   ;;  %v902_v2 = vpop.eup %901 }
 0x176   :  { %v904_v49 = vpop.eup %903 }
 0x177   :  { %v1490_v39 = vpop.permute.xlu1 %348 }
 0x17d   :  { %336 = vperm.xlu2 %852, %v52_v19   ;;  %v491_v19 = vmul.f32 0.6931472, %v900_v47 }
 0x185   :  { %345 = vperm.xlu2 %852, %v55_v8   ;;  %v1495_v8 = vpop.permute.xlu1 %357 }
 0x18d   :  { %354 = vperm.xlu2 %852, %v58_v55   ;;  %v493_v55 = vmul.f32 0.6931472, %v902_v2  ;;  %v1500_v23 = vpop.permute.xlu1 %360 }
 0x18f   :  { %v541_v10 = vadd.f32 %v493_v55, %v1241_v61 }
 0x195   :  { %363 = vperm.xlu2 %852, %v61_v62   ;;  %v540_v62 = vadd.f32 %v491_v19, %v1229_v53 }
 0x1af   :  { %v417_v40 = vpop.xlane.xlu0 %416 }
 0x1b0   :  { %v565_v34 = vsub.f32 %v540_v62, %v417_v40  ;;  %v420_v59 = vpop.xlane.xlu2 %419  ;;  %v495_v40 = vmul.f32 0.6931472, %v904_v49 }
 0x1b1   :  { %v566_v33 = vsub.f32 %v541_v10, %v420_v59 }
 0x1b2   :  { %v590_v54 = vmax.f32 %v565_v34, 0.0  ;;  %v398_v34 = vsel %vm373_vm7, %v1093_v12, 0.0  ;;  %v542_v56 = vadd.f32 %v495_v40, %v1225_v51  ;;  %vm388_vm7 = vcmp.eq.s32.totalorder %v1428_v15, %v1500_v23 }
 0x1b3   :  { %v591_v43 = vmax.f32 %v566_v33, 0.0  ;;  %v439_v19 = vsel %vm62_vm0, %v398_v34, 0.0 }
 0x1b4   :  { %v615_v63 = vsub.f32 0.0, %v590_v54 }
 0x1b5   :  { %v616_v47 = vsub.f32 0.0, %v591_v43 }
 0x1b6   :  { %v640_v60 = vmul.f32 1.442695, %v615_v63 }
 0x1b7   :  { %v642_v53 = vmul.f32 1.442695, %v616_v47 }
 0x1b8   :  { %905 = vpow2.f32 %v640_v60  ;;  %v301_v2 = vpop.permute.xlu2 %300 }
 0x1b9   :  { %907 = vpow2.f32 %v642_v53  ;;  %vm368_vm8 = vcmp.eq.s32.totalorder %v1428_v15, %v301_v2 }
 0x1ba   :  { %v393_v61 = vsel %vm368_vm8, %v1077_v7, 0.0  ;;  %vm384_vm8 = vcmp.eq.s32.totalorder %v1428_v15, %v1490_v39 }
 0x1bb   :  { %v424_v33 = vsel %vm62_vm0, %v393_v61, 0.0  ;;  %v409_v23 = vsel %vm384_vm8, %v1182_v37, 0.0 }
 0x1bc   :  { %425 = vadd.xlane.f32.xlu0 %v424_v33 }
 0x1be   :  { %v906_v10 = vpop.eup %905  ;;  %v423_v60 = vpop.xlane.xlu1 %422  ;;  %440 = vadd.xlane.f32.xlu2 %v439_v19 }
 0x1bf   :  { %v690_v27 = vsub.f32 1.0, %v906_v10  ;;  %v908_v55 = vpop.eup %907  ;;  %v567_v49 = vsub.f32 %v542_v56, %v423_v60 }
 0x1c0   :  { %v691_v59 = vsub.f32 1.0, %v908_v55  ;;  %v304_v63 = vpop.permute.xlu2 %303 }
 0x1c1   :  { %v715_v62 = vmul.f32 %v690_v27, %v690_v27  ;;  %v592_v47 = vmax.f32 %v567_v49, 0.0  ;;  %vm369_vm9 = vcmp.eq.s32.totalorder %v1428_v15, %v304_v63 }
 0x1c2   :  { %v716_v12 = vmul.f32 %v691_v59, %v691_v59  ;;  %v394_v53 = vsel %vm369_vm9, %v1051_v0, 0.0 }
 0x1c3   :  { %v740_v7 = vmul.f32 %v715_v62, %v590_v54  ;;  %v617_v2 = vsub.f32 0.0, %v592_v47  ;;  %v427_v51 = vsel %vm62_vm0, %v394_v53, 0.0  ;;  %v403_v53 = vsel %vm378_vm1, %v1140_v25, 0.0 }
 0x1c4   :  { %v741_v40 = vmul.f32 %v716_v12, %v591_v43  ;;  %428 = vadd.xlane.f32.xlu0 %v427_v51 }
 0x1c5   :  { %v644_v61 = vmul.f32 1.442695, %v617_v2  ;;  %v766_v34 = vsel %vm765_vm10, %v740_v7, 0.0  ;;  %v401_v7 = vsel %vm376_vm13, %v1114_v18, 0.0  ;;  %v404_v18 = vsel %vm379_vm15, %v1135_v24, 0.0 }
 0x1c6   :  { %v767_v33 = vsel %vm765_vm10, %v741_v40, 0.0  ;;  %v454_v2 = vsel %vm62_vm0, %v403_v53, 0.0  ;;  %v457_v51 = vsel %vm62_vm0, %v404_v18, 0.0  ;;  %v406_v24 = vsel %vm381_vm3, %v1161_v31, 0.0 }
 0x1c7   :  { %v768_v10 = vadd.f32 %v767_v33, %v766_v34  ;;  %909 = vpow2.f32 %v644_v61  ;;  %v161_v40 = vsub.f32 %v1219_v48, %v1373_v46  ;;  %v162_v34 = vsub.f32 %v1210_v45, %v1363_v35 }
 0x1c8   :  { %v310_v56 = vpop.permute.xlu2 %309  ;;  %vm827_vm13 = vcmp.eq.s32.totalorder %v1428_v15, 0 }
 0x1c9   :  { %vm371_vm11 = vcmp.eq.s32.totalorder %v1428_v15, %v310_v56  ;;  %v209_v31 = vmul.f32 1.442695, %v161_v40  ;;  %v410_v56 = vsel %vm385_vm5, %v1177_v36, 0.0 }
 0x1ca   :  { %v396_v54 = vsel %vm371_vm11, %v1103_v14, 0.0  ;;  %vm387_vm11 = vcmp.eq.s32.totalorder %v1428_v15, %v1495_v8  ;;  %v432_v8 = vpop.xlane.xlu1 %431 }
 0x1cb   :  { %v433_v0 = vsel %vm62_vm0, %v396_v54, 0.0  ;;  %v407_v54 = vsel %vm382_vm6, %v1156_v30, 0.0  ;;  %v412_v39 = vsel %vm387_vm11, %v1205_v44, 0.0 }
 0x1cc   :  { %434 = vadd.xlane.f32.xlu0 %v433_v0  ;;  %v466_v13 = vsel %vm62_vm0, %v407_v54, 0.0  ;;  %v481_v37 = vsel %vm62_vm0, %v412_v39, 0.0 }
 0x1cd   :  { %v910_v19 = vpop.eup %909 }
 0x1ce   :  { %v692_v27 = vsub.f32 1.0, %v910_v19  ;;  %v475_v19 = vsel %vm62_vm0, %v410_v56, 0.0 }
 0x1d0   :  { %v717_v60 = vmul.f32 %v692_v27, %v692_v27  ;;  %v319_v43 = vpop.permute.xlu2 %318  ;;  %v413_v27 = vsel %vm388_vm7, %v1219_v48, 0.0 }
 0x1d1   :  { %vm374_vm12 = vcmp.eq.s32.totalorder %v1428_v15, %v319_v43  ;;  %v484_v43 = vsel %vm62_vm0, %v413_v27, 0.0 }
 0x1d2   :  { %v742_v55 = vmul.f32 %v717_v60, %v592_v47  ;;  %v399_v49 = vsel %vm374_vm12, %v1124_v20, 0.0  ;;  %v448_v20 = vsel %vm62_vm0, %v401_v7, 0.0  ;;  %v438_v18 = vpop.xlane.xlu1 %437 }
 0x1d3   :  { %v442_v62 = vsel %vm62_vm0, %v399_v49, 0.0 }
 0x1d4   :  { %v769_v59 = vsel %vm765_vm10, %v742_v55, 0.0  ;;  %443 = vadd.xlane.f32.xlu0 %v442_v62  ;;  %v472_v62 = vsel %vm62_vm0, %v409_v23, 0.0  ;;  %v1742_v23 = vld [vmem:[#allocation5_spill] sm:$0xff] }
 0x1d5   :  { %v1523_v14 = vadd.f32 %v769_v59, %v768_v10 }
 0x1d8   :  { %v328_v63 = vpop.permute.xlu2 %327 }
 0x1d9   :  { %vm377_vm14 = vcmp.eq.s32.totalorder %v1428_v15, %v328_v63 }
 0x1da   :  { %v402_v12 = vsel %vm377_vm14, %v1145_v26, 0.0  ;;  %v160_v26 = vsub.f32 %v1205_v44, %v1368_v41 }
 0x1db   :  { %v451_v47 = vsel %vm62_vm0, %v402_v12, 0.0 }
 0x1dc   :  { %452 = vadd.xlane.f32.xlu1 %v451_v47  ;;  %449 = vadd.xlane.f32.xlu0 %v448_v20  ;;  %v207_v11 = vmul.f32 1.442695, %v160_v26 }
 0x1de   :  { %911 = vpow2.f32 %v207_v11 }
 0x1df   :  { %913 = vpow2.f32 %v209_v31  ;;  %v447_v31 = vpop.xlane.xlu1 %446 }
 0x1e0   :  { %v337_v52 = vpop.permute.xlu2 %336 }
 0x1e1   :  { %vm380_vm2 = vcmp.eq.s32.totalorder %v1428_v15, %v337_v52 }
 0x1e2   :  { %v405_v25 = vsel %vm380_vm2, %v1166_v32, 0.0  ;;  %v463_v32 = vsel %vm62_vm0, %v406_v24, 0.0 }
 0x1e3   :  { %v460_v6 = vsel %vm62_vm0, %v405_v25, 0.0 }
 0x1e4   :  { %455 = vadd.xlane.f32.xlu0 %v454_v2  ;;  %458 = vadd.xlane.f32.xlu1 %v457_v51  ;;  %v912_v10 = vpop.eup %911 }
 0x1e5   :  { %v279_v0 = vsel %vm62_vm0, %v912_v10, 0.0  ;;  %v914_v22 = vpop.eup %913  ;;  %v1740_v10 = vld [vmem:[#allocation7_spill] sm:$0xff] }
 0x1e6   :  { %v282_v30 = vsel %vm62_vm0, %v914_v22, 0.0 }
 0x1e8   :  { %v346_v1 = vpop.permute.xlu2 %345 }
 0x1e9   :  { %vm383_vm4 = vcmp.eq.s32.totalorder %v1428_v15, %v346_v1 }
 0x1ea   :  { %v408_v61 = vsel %vm383_vm4, %v1187_v38, 0.0  ;;  %v211_v38 = vmul.f32 1.442695, %v162_v34 }
 0x1eb   :  { %v469_v33 = vsel %vm62_vm0, %v408_v61, 0.0 }
 0x1ec   :  { %470 = vadd.xlane.f32.xlu2 %v469_v33  ;;  %461 = vadd.xlane.f32.xlu0 %v460_v6  ;;  %915 = vpow2.f32 %v211_v38 }
 0x1ed   :  { %464 = vadd.xlane.f32.xlu1 %v463_v32  ;;  %917 = vlog2.f32 %v1384_v3 }
 0x1ee   :  { %919 = vlog2.f32 %v1389_v5 }
 0x1ef   :  { %921 = vlog2.f32 %v1400_v29 }
 0x1f0   :  { %v355_v60 = vpop.permute.xlu2 %354  ;;  %923 = vlog2.f32 %v1393_v16 }
 0x1f1   :  { %vm386_vm9 = vcmp.eq.s32.totalorder %v1428_v15, %v355_v60  ;;  %925 = vlog2.f32 %v1391_v9 }
 0x1f2   :  { %v916_v36 = vpop.eup %915  ;;  %v411_v48 = vsel %vm386_vm9, %v1198_v42, 0.0  ;;  %927 = vlog2.f32 %v1409_v4 }
 0x1f3   :  { %v285_v55 = vsel %vm62_vm0, %v916_v36, 0.0  ;;  %v478_v59 = vsel %vm62_vm0, %v411_v48, 0.0  ;;  %v918_v7 = vpop.eup %917  ;;  %929 = vlog2.f32 %v1398_v28 }
 0x1f4   :  { %280 = vadd.xlane.f32.xlu0 %v279_v0  ;;  %476 = vadd.xlane.f32.xlu2 %v475_v19  ;;  %v501_v12 = vmul.f32 0.6931472, %v918_v7  ;;  %v920_v44 = vpop.eup %919  ;;  %v1744_v7 = vld [vmem:[#allocation23_spill] sm:$0xff] }
 0x1f5   :  { %467 = vadd.xlane.f32.xlu1 %v466_v13  ;;  %v922_v47 = vpop.eup %921  ;;  %v497_v20 = vmul.f32 0.6931472, %v920_v44 }
 0x1f6   :  { %v924_v53 = vpop.eup %923  ;;  %v505_v3 = vmul.f32 0.6931472, %v922_v47 }
 0x1f7   :  { %v926_v5 = vpop.eup %925  ;;  %v507_v26 = vmul.f32 0.6931472, %v924_v53  ;;  %v543_v2 = vadd.f32 %v497_v20, %v1235_v58 }
 0x1f8   :  { %v364_v49 = vpop.permute.xlu2 %363  ;;  %v547_v9 = vadd.f32 %v505_v3, %v1251_v21  ;;  %v928_v51 = vpop.eup %927  ;;  %v499_v11 = vmul.f32 0.6931472, %v926_v5 }
 0x1f9   :  { %vm389_vm12 = vcmp.eq.s32.totalorder %v1428_v15, %v364_v49  ;;  %v548_v40 = vadd.f32 %v507_v26, %v1249_v17  ;;  %v511_v61 = vmul.f32 0.6931472, %v928_v51  ;;  %v930_v6 = vpop.eup %929  ;;  %v1741_v17 = vld [vmem:[#allocation20_spill] sm:$0xff]  ;;  %v1746_v51 = vld [vmem:[#allocation21_spill] sm:$0xff] }
 0x1fa   :  { %v414_v63 = vsel %vm389_vm12, %v1210_v45, 0.0  ;;  %v545_v45 = vadd.f32 %v501_v12, %v1233_v57  ;;  %v572_v4 = vsub.f32 %v547_v9, %v438_v18  ;;  %v544_v21 = vadd.f32 %v499_v11, %v1223_v50 }
 0x1fb   :  { %v487_v42 = vsel %vm62_vm0, %v414_v63, 0.0  ;;  %v550_v56 = vadd.f32 %v511_v61, %v1740_v10  ;;  %v503_v19 = vmul.f32 0.6931472, %v930_v6 }
 0x1fc   :  { %283 = vadd.xlane.f32.xlu0 %v282_v30  ;;  %485 = vadd.xlane.f32.xlu2 %v484_v43  ;;  %v570_v52 = vsub.f32 %v545_v45, %v432_v8  ;;  %v1597_v32 = vmax.f32 %v572_v4, 0.0 }
 0x1fd   :  { %286 = vadd.xlane.f32.xlu1 %v285_v55  ;;  %v575_v22 = vsub.f32 %v550_v56, %v447_v31  ;;  %v546_v48 = vadd.f32 %v503_v19, %v1742_v23 }
 0x1fe   :  { %v1590_v29 = vmax.f32 %v570_v52, 0.0  ;;  %v622_v13 = vsub.f32 0.0, %v1597_v32 }
 0x1ff   :  { %v1606_v43 = vmax.f32 %v575_v22, 0.0 }
 0x200   :  { %v620_v25 = vsub.f32 0.0, %v1590_v29  ;;  %v654_v30 = vmul.f32 1.442695, %v622_v13  ;;  %v1748_v13 = vld [vmem:[#allocation11_spill] sm:$0xff] }
 0x201   :  { %v625_v44 = vsub.f32 0.0, %v1606_v43 }
 0x202   :  { %v650_v58 = vmul.f32 1.442695, %v620_v25 }
 0x203   :  { %v660_v5 = vmul.f32 1.442695, %v625_v44 }
 0x204   :  { %473 = vadd.xlane.f32.xlu0 %v472_v62  ;;  %v1743_v62 = vld [vmem:[#allocation19_spill] sm:$0xff] }
 0x205   :  { %479 = vadd.xlane.f32.xlu1 %v478_v59 }
 0x20c   :  { %482 = vadd.xlane.f32.xlu0 %v481_v37 }
 0x20d   :  { %488 = vadd.xlane.f32.xlu1 %v487_v42 }
 0x22f   :  { %v426_v16 = vpop.xlane.xlu0 %425 }
 0x230   :  { %v568_v57 = vsub.f32 %v543_v2, %v426_v16  ;;  %v1745_v16 = vld [vmem:[#allocation8_spill] sm:$0xff] }
 0x231   :  { %v441_v1 = vpop.xlane.xlu2 %440 }
 0x232   :  { %v593_v24 = vmax.f32 %v568_v57, 0.0  ;;  %v573_v33 = vsub.f32 %v548_v40, %v441_v1  ;;  %v1747_v40 = vld [vmem:[#allocation22_spill] sm:$0xff] }
 0x234   :  { %v618_v34 = vsub.f32 0.0, %v593_v24  ;;  %v1601_v54 = vmax.f32 %v573_v33, 0.0 }
 0x236   :  { %v646_v28 = vmul.f32 1.442695, %v618_v34  ;;  %v623_v36 = vsub.f32 0.0, %v1601_v54 }
 0x237   :  { %v429_v38 = vpop.xlane.xlu0 %428 }
 0x238   :  { %931 = vpow2.f32 %v646_v28  ;;  %v569_v0 = vsub.f32 %v544_v21, %v429_v38  ;;  %v656_v37 = vmul.f32 1.442695, %v623_v36  ;;  %v1749_v36 = vld [vmem:[#allocation6_spill] sm:$0xff] }
 0x239   :  { %933 = vlog2.f32 %v1741_v17 }
 0x23a   :  { %935 = vpow2.f32 %v650_v58  ;;  %v594_v27 = vmax.f32 %v569_v0, 0.0 }
 0x23b   :  { %937 = vlog2.f32 %v1743_v62 }
 0x23c   :  { %v619_v60 = vsub.f32 0.0, %v594_v27 }
 0x23e   :  { %v932_v50 = vpop.eup %931  ;;  %v648_v55 = vmul.f32 1.442695, %v619_v60 }
 0x23f   :  { %v934_v49 = vpop.eup %933  ;;  %v693_v59 = vsub.f32 1.0, %v932_v50  ;;  %v435_v39 = vpop.xlane.xlu0 %434 }
 0x240   :  { %v936_v63 = vpop.eup %935  ;;  %939 = vpow2.f32 %v648_v55  ;;  %v571_v42 = vsub.f32 %v546_v48, %v435_v39  ;;  %v509_v12 = vmul.f32 0.6931472, %v934_v49 }
 0x241   :  { %941 = vlog2.f32 %v1744_v7  ;;  %v718_v8 = vmul.f32 %v693_v59, %v693_v59  ;;  %v695_v47 = vsub.f32 1.0, %v936_v63  ;;  %v938_v53 = vpop.eup %937 }
 0x242   :  { %943 = vpow2.f32 %v654_v30  ;;  %v596_v45 = vmax.f32 %v571_v42, 0.0  ;;  %v549_v9 = vadd.f32 %v509_v12, %v1745_v16  ;;  %v513_v33 = vmul.f32 0.6931472, %v938_v53  ;;  %v1750_v30 = vld [vmem:[#allocation26_spill] sm:$0xff]  ;;  %v1752_v12 = vld [vmem:[#allocation25_spill] sm:$0xff] }
 0x243   :  { %v743_v20 = vmul.f32 %v718_v8, %v593_v24  ;;  %945 = vpow2.f32 %v656_v37  ;;  %v720_v11 = vmul.f32 %v695_v47, %v695_v47  ;;  %v1751_v37 = vld [vmem:[#allocation29_spill] sm:$0xff] }
 0x244   :  { %v621_v52 = vsub.f32 0.0, %v596_v45  ;;  %947 = vlog2.f32 %v1746_v51  ;;  %v551_v60 = vadd.f32 %v513_v33, %v1749_v36 }
 0x245   :  { %v771_v3 = vsel %vm765_vm10, %v743_v20, 0.0  ;;  %v745_v58 = vmul.f32 %v720_v11, %v1590_v29 }
 0x246   :  { %v940_v18 = vpop.eup %939  ;;  %v772_v26 = vadd.f32 %v771_v3, %v1523_v14  ;;  %v652_v2 = vmul.f32 1.442695, %v621_v52  ;;  %v1753_v3 = vld [vmem:[#allocation24_spill] sm:$0xff] }
 0x247   :  { %v942_v57 = vpop.eup %941  ;;  %v694_v1 = vsub.f32 1.0, %v940_v18  ;;  %v444_v25 = vpop.xlane.xlu0 %443  ;;  %v775_v29 = vsel %vm765_vm10, %v745_v58, 0.0 }
 0x248   :  { %v944_v4 = vpop.eup %943  ;;  %949 = vpow2.f32 %v652_v2  ;;  %v574_v24 = vsub.f32 %v549_v9, %v444_v25  ;;  %v515_v6 = vmul.f32 0.6931472, %v942_v57  ;;  %v1754_v9 = vld [vmem:[#allocation9_spill] sm:$0xff] }
 0x249   :  { %951 = vlog2.f32 %v1747_v40  ;;  %v719_v61 = vmul.f32 %v694_v1, %v694_v1  ;;  %v946_v34 = vpop.eup %945  ;;  %v697_v28 = vsub.f32 1.0, %v944_v4 }
 0x24a   :  { %953 = vpow2.f32 %v660_v5  ;;  %v1617_v14 = vmax.f32 %v574_v24, 0.0  ;;  %v948_v38 = vpop.eup %947  ;;  %v698_v10 = vsub.f32 1.0, %v946_v34  ;;  %v552_v22 = vadd.f32 %v515_v6, %v1748_v13  ;;  %v1756_v24 = vld [vmem:[#allocation28_spill] sm:$0xff] }
 0x24b   :  { %v744_v21 = vmul.f32 %v719_v61, %v594_v27  ;;  %955 = vlog2.f32 %v1750_v30  ;;  %v722_v55 = vmul.f32 %v697_v28, %v697_v28  ;;  %v519_v63 = vmul.f32 0.6931472, %v948_v38 }
 0x24c   :  { %v624_v31 = vsub.f32 0.0, %v1617_v14  ;;  %v723_v42 = vmul.f32 %v698_v10, %v698_v10 }
 0x24d   :  { %v773_v56 = vsel %vm765_vm10, %v744_v21, 0.0  ;;  %v747_v20 = vmul.f32 %v722_v55, %v1597_v32  ;;  %v554_v57 = vadd.f32 %v519_v63, %v1754_v9  ;;  %v1755_v32 = vld [vmem:[#allocation10_spill] sm:$0xff] }
 0x24e   :  { %v950_v0 = vpop.eup %949  ;;  %v774_v19 = vadd.f32 %v773_v56, %v772_v26  ;;  %v658_v17 = vmul.f32 1.442695, %v624_v31  ;;  %v748_v2 = vmul.f32 %v723_v42, %v1601_v54 }
 0x24f   :  { %v952_v50 = vpop.eup %951  ;;  %v696_v27 = vsub.f32 1.0, %v950_v0  ;;  %v453_v23 = vpop.xlane.xlu1 %452  ;;  %v779_v40 = vsel %vm765_vm10, %v747_v20, 0.0 }
 0x250   :  { %v450_v48 = vpop.xlane.xlu0 %449  ;;  %v954_v49 = vpop.eup %953  ;;  %v776_v62 = vadd.f32 %v775_v29, %v774_v19  ;;  %957 = vpow2.f32 %v658_v17  ;;  %v577_v59 = vsub.f32 %v552_v22, %v453_v23  ;;  %v517_v8 = vmul.f32 0.6931472, %v952_v50 }
 0x251   :  { %v576_v39 = vsub.f32 %v551_v60, %v450_v48  ;;  %959 = vlog2.f32 %v1751_v37  ;;  %v721_v7 = vmul.f32 %v696_v27, %v696_v27  ;;  %v700_v52 = vsub.f32 1.0, %v954_v49  ;;  %v956_v26 = vpop.eup %955 }
 0x252   :  { %961 = vlog2.f32 %v1752_v12  ;;  %v1628_v44 = vmax.f32 %v577_v59, 0.0  ;;  %v553_v4 = vadd.f32 %v517_v8, %v1755_v32  ;;  %v781_v31 = vsel %vm765_vm10, %v748_v2, 0.0  ;;  %v1757_v59 = vld [vmem:[#allocation17_spill] sm:$0xff]  ;;  %v1759_v8 = vld [vmem:[#allocation14_spill] sm:$0xff] }
 0x253   :  { %v1630_v47 = vmax.f32 %v576_v39, 0.0  ;;  %v746_v53 = vmul.f32 %v721_v7, %v596_v45  ;;  %963 = vlog2.f32 %v1753_v3  ;;  %v725_v61 = vmul.f32 %v700_v52, %v700_v52 }
 0x254   :  { %v627_v18 = vsub.f32 0.0, %v1628_v44  ;;  %965 = vlog2.f32 %v1756_v24  ;;  %v521_v13 = vmul.f32 0.6931472, %v956_v26  ;;  %v1760_v24 = vld [vmem:[#allocation12_spill] sm:$0xff] }
 0x255   :  { %v626_v5 = vsub.f32 0.0, %v1630_v47  ;;  %v777_v16 = vsel %vm765_vm10, %v746_v53, 0.0  ;;  %v750_v36 = vmul.f32 %v725_v61, %v1606_v43 }
 0x256   :  { %v958_v51 = vpop.eup %957  ;;  %v778_v11 = vadd.f32 %v777_v16, %v776_v62  ;;  %v664_v1 = vmul.f32 1.442695, %v627_v18  ;;  %v555_v12 = vadd.f32 %v521_v13, %v1759_v8 }
 0x257   :  { %v662_v25 = vmul.f32 1.442695, %v626_v5  ;;  %v960_v45 = vpop.eup %959  ;;  %v699_v34 = vsub.f32 1.0, %v958_v51  ;;  %v459_v33 = vpop.xlane.xlu1 %458  ;;  %v785_v37 = vsel %vm765_vm10, %v750_v36, 0.0 }
 0x258   :  { %v456_v6 = vpop.xlane.xlu0 %455  ;;  %v962_v54 = vpop.eup %961  ;;  %v780_v58 = vadd.f32 %v779_v40, %v778_v11  ;;  %967 = vpow2.f32 %v664_v1  ;;  %v579_v28 = vsub.f32 %v554_v57, %v459_v33  ;;  %v527_v56 = vmul.f32 0.6931472, %v960_v45 }
 0x259   :  { %v578_v21 = vsub.f32 %v553_v4, %v456_v6  ;;  %v724_v38 = vmul.f32 %v699_v34, %v699_v34  ;;  %969 = vpow2.f32 %v662_v25  ;;  %v964_v10 = vpop.eup %963  ;;  %v523_v22 = vmul.f32 0.6931472, %v962_v54  ;;  %v1761_v34 = vld [vmem:[#allocation27_spill] sm:$0xff] }
 0x25a   :  { %v782_v0 = vadd.f32 %v781_v31, %v780_v58  ;;  %v1643_v19 = vmax.f32 %v579_v28, 0.0  ;;  %v966_v29 = vpop.eup %965  ;;  %v525_v55 = vmul.f32 0.6931472, %v964_v10  ;;  %v558_v39 = vadd.f32 %v527_v56, %v1757_v59  ;;  %v1762_v54 = vld [vmem:[#allocation15_spill] sm:$0xff]  ;;  %v1763_v56 = vld [vmem:[#allocation30_spill] sm:$0xff] }
 0x25b   :  { %v1645_v17 = vmax.f32 %v578_v21, 0.0  ;;  %v749_v60 = vmul.f32 %v724_v38, %v1617_v14  ;;  %v1758_v14 = vld [vmem:[#allocation13_spill] sm:$0xff]  ;;  %v531_v16 = vmul.f32 0.6931472, %v966_v29 }
 0x25c   :  { %v629_v50 = vsub.f32 0.0, %v1643_v19  ;;  %v556_v7 = vadd.f32 %v523_v22, %v1758_v14  ;;  %v557_v40 = vadd.f32 %v525_v55, %v1760_v24  ;;  %v1765_v24 = vld [vmem:[#allocation18_spill] sm:$0xff] }
 0x25d   :  { %v628_v30 = vsub.f32 0.0, %v1645_v17  ;;  %v783_v27 = vsel %vm765_vm10, %v749_v60, 0.0  ;;  %v560_v58 = vadd.f32 %v531_v16, %v1762_v54 }
 0x25e   :  { %v968_v23 = vpop.eup %967  ;;  %v784_v48 = vadd.f32 %v783_v27, %v782_v0  ;;  %v668_v49 = vmul.f32 1.442695, %v629_v50 }
 0x25f   :  { %v666_v62 = vmul.f32 1.442695, %v628_v30  ;;  %v970_v63 = vpop.eup %969  ;;  %v702_v43 = vsub.f32 1.0, %v968_v23  ;;  %v471_v42 = vpop.xlane.xlu2 %470 }
 0x260   :  { %v462_v20 = vpop.xlane.xlu0 %461  ;;  %v786_v52 = vadd.f32 %v785_v37, %v784_v48  ;;  %v701_v53 = vsub.f32 1.0, %v970_v63  ;;  %971 = vpow2.f32 %v668_v49  ;;  %v583_v3 = vsub.f32 %v558_v39, %v471_v42  ;;  %v465_v18 = vpop.xlane.xlu1 %464 }
 0x261   :  { %v727_v5 = vmul.f32 %v702_v43, %v702_v43  ;;  %973 = vpow2.f32 %v666_v62  ;;  %v581_v26 = vsub.f32 %v556_v7, %v465_v18  ;;  %v580_v2 = vsub.f32 %v555_v12, %v462_v20 }
 0x262   :  { %v726_v9 = vmul.f32 %v701_v53, %v701_v53  ;;  %v1656_v57 = vmax.f32 %v583_v3, 0.0  ;;  %975 = vlog2.f32 %v1761_v34 }
 0x263   :  { %v606_v51 = vmax.f32 %v581_v26, 0.0  ;;  %v605_v11 = vmax.f32 %v580_v2, 0.0  ;;  %v752_v1 = vmul.f32 %v727_v5, %v1628_v44  ;;  %977 = vlog2.f32 %v1763_v56 }
 0x264   :  { %v751_v25 = vmul.f32 %v726_v9, %v1630_v47  ;;  %v633_v32 = vsub.f32 0.0, %v1656_v57 }
 0x265   :  { %v631_v4 = vsub.f32 0.0, %v606_v51  ;;  %v630_v45 = vsub.f32 0.0, %v605_v11  ;;  %v789_v0 = vsel %vm765_vm10, %v752_v1, 0.0 }
 0x266   :  { %v972_v61 = vpop.eup %971  ;;  %v787_v33 = vsel %vm765_vm10, %v751_v25, 0.0  ;;  %v676_v6 = vmul.f32 1.442695, %v633_v32  ;;  %v1764_v25 = vld [vmem:[#allocation16_spill] sm:$0xff] }
 0x267   :  { %v974_v28 = vpop.eup %973  ;;  %v788_v21 = vadd.f32 %v787_v33, %v786_v52  ;;  %v704_v31 = vsub.f32 1.0, %v972_v61  ;;  %v672_v44 = vmul.f32 1.442695, %v631_v4  ;;  %v670_v38 = vmul.f32 1.442695, %v630_v45  ;;  %v477_v47 = vpop.xlane.xlu2 %476 }
 0x268   :  { %v281_v10 = vpop.xlane.xlu0 %280  ;;  %v703_v13 = vsub.f32 1.0, %v974_v28  ;;  %v468_v22 = vpop.xlane.xlu1 %467  ;;  %v585_v36 = vsub.f32 %v560_v58, %v477_v47 }
 0x269   :  { %v729_v60 = vmul.f32 %v704_v31, %v704_v31  ;;  %v790_v50 = vadd.f32 %v789_v0, %v788_v21  ;;  %979 = vpow2.f32 %v672_v44  ;;  %v582_v30 = vsub.f32 %v557_v40, %v468_v22  ;;  %v976_v27 = vpop.eup %975 }
 0x26a   :  { %v728_v29 = vmul.f32 %v703_v13, %v703_v13  ;;  %981 = vpow2.f32 %v670_v38  ;;  %v1669_v62 = vmax.f32 %v585_v36, 0.0  ;;  %v978_v59 = vpop.eup %977  ;;  %v529_v53 = vmul.f32 0.6931472, %v976_v27 }
 0x26b   :  { %983 = vpow2.f32 %v676_v6  ;;  %v607_v55 = vmax.f32 %v582_v30, 0.0  ;;  %v754_v23 = vmul.f32 %v729_v60, %v1643_v19  ;;  %v533_v18 = vmul.f32 0.6931472, %v978_v59 }
 0x26c   :  { %v753_v48 = vmul.f32 %v728_v29, %v1645_v17  ;;  %985 = vlog2.f32 %v281_v10  ;;  %v635_v17 = vsub.f32 0.0, %v1669_v62  ;;  %v559_v32 = vadd.f32 %v529_v53, %v1764_v25 }
 0x26d   :  { %v632_v49 = vsub.f32 0.0, %v607_v55  ;;  %v793_v7 = vsel %vm765_vm10, %v754_v23, 0.0  ;;  %v561_v40 = vadd.f32 %v533_v18, %v1765_v24 }
 0x26e   :  { %v791_v39 = vsel %vm765_vm10, %v753_v48, 0.0  ;;  %v680_v9 = vmul.f32 1.442695, %v635_v17 }
 0x26f   :  { %v980_v63 = vpop.eup %979  ;;  %v792_v37 = vadd.f32 %v791_v39, %v790_v50  ;;  %v674_v43 = vmul.f32 1.442695, %v632_v49  ;;  %v486_v50 = vpop.xlane.xlu2 %485 }
 0x270   :  { %v284_v42 = vpop.xlane.xlu0 %283  ;;  %v982_v14 = vpop.eup %981  ;;  %v706_v8 = vsub.f32 1.0, %v980_v63 }
 0x271   :  { %v287_v12 = vpop.xlane.xlu1 %286  ;;  %v984_v20 = vpop.eup %983  ;;  %v794_v19 = vadd.f32 %v793_v7, %v792_v37  ;;  %v705_v52 = vsub.f32 1.0, %v982_v14  ;;  %987 = vpow2.f32 %v674_v43 }
 0x272   :  { %v731_v3 = vmul.f32 %v706_v8, %v706_v8  ;;  %989 = vlog2.f32 %v287_v12  ;;  %v708_v26 = vsub.f32 1.0, %v984_v20  ;;  %v986_v1 = vpop.eup %985 }
 0x273   :  { %v730_v5 = vmul.f32 %v705_v52, %v705_v52  ;;  %991 = vlog2.f32 %v284_v42 }
 0x274   :  { %v756_v2 = vmul.f32 %v731_v3, %v606_v51  ;;  %v733_v33 = vmul.f32 %v708_v26, %v708_v26  ;;  %993 = vpow2.f32 %v680_v9 }
 0x275   :  { %v755_v16 = vmul.f32 %v730_v5, %v605_v11  ;;  %v535_v11 = vmul.f32 0.6931472, %v986_v1 }
 0x276   :  { %v797_v51 = vsel %vm765_vm10, %v756_v2, 0.0  ;;  %v758_v13 = vmul.f32 %v733_v33, %v1656_v57 }
 0x277   :  { %v988_v4 = vpop.eup %987  ;;  %v795_v45 = vsel %vm765_vm10, %v755_v16, 0.0  ;;  %v562_v48 = vadd.f32 %v535_v11, %v1368_v41 }
 0x278   :  { %v474_v61 = vpop.xlane.xlu0 %473  ;;  %v990_v34 = vpop.eup %989  ;;  %v796_v6 = vadd.f32 %v795_v45, %v794_v19  ;;  %v707_v54 = vsub.f32 1.0, %v988_v4  ;;  %v801_v57 = vsel %vm765_vm10, %v758_v13, 0.0 }
 0x279   :  { %v480_v58 = vpop.xlane.xlu1 %479  ;;  %v584_v28 = vsub.f32 %v559_v32, %v474_v61  ;;  %v992_v21 = vpop.eup %991  ;;  %v539_v56 = vmul.f32 0.6931472, %v990_v34 }
 0x27a   :  { %v586_v31 = vsub.f32 %v561_v40, %v480_v58  ;;  %v732_v44 = vmul.f32 %v707_v54, %v707_v54  ;;  %v798_v38 = vadd.f32 %v797_v51, %v796_v6  ;;  %v537_v47 = vmul.f32 0.6931472, %v992_v21  ;;  %v994_v49 = vpop.eup %993 }
 0x27b   :  { %v609_v10 = vmax.f32 %v584_v28, 0.0  ;;  %v564_v63 = vadd.f32 %v539_v56, %v1363_v35  ;;  %v710_v12 = vsub.f32 1.0, %v994_v49 }
 0x27c   :  { %v611_v0 = vmax.f32 %v586_v31, 0.0  ;;  %v757_v22 = vmul.f32 %v732_v44, %v607_v55  ;;  %v563_v36 = vadd.f32 %v537_v47, %v1373_v46 }
 0x27d   :  { %v634_v60 = vsub.f32 0.0, %v609_v10  ;;  %v735_v3 = vmul.f32 %v710_v12, %v710_v12 }
 0x27e   :  { %v636_v30 = vsub.f32 0.0, %v611_v0  ;;  %v799_v29 = vsel %vm765_vm10, %v757_v22, 0.0  ;;  %v588_v27 = vsub.f32 %v563_v36, %v486_v50 }
 0x27f   :  { %v678_v23 = vmul.f32 1.442695, %v634_v60  ;;  %v800_v59 = vadd.f32 %v799_v29, %v798_v38  ;;  %v760_v9 = vmul.f32 %v735_v3, %v1669_v62 }
 0x280   :  { %v682_v39 = vmul.f32 1.442695, %v636_v30  ;;  %v483_v37 = vpop.xlane.xlu0 %482  ;;  %v613_v55 = vmax.f32 %v588_v27, 0.0 }
 0x281   :  { %995 = vpow2.f32 %v678_v23  ;;  %v489_v46 = vpop.xlane.xlu1 %488  ;;  %v587_v43 = vsub.f32 %v562_v48, %v483_v37  ;;  %v802_v42 = vadd.f32 %v801_v57, %v800_v59  ;;  %v805_v34 = vsel %vm765_vm10, %v760_v9, 0.0 }
 0x282   :  { %997 = vpow2.f32 %v682_v39  ;;  %v589_v14 = vsub.f32 %v564_v63, %v489_v46  ;;  %v638_v7 = vsub.f32 0.0, %v613_v55  ;;  %v1766_v23 = vlaneseq }
 0x283   :  { %v612_v8 = vmax.f32 %v587_v43, 0.0 }
 0x284   :  { %v614_v20 = vmax.f32 %v589_v14, 0.0  ;;  %v686_v41 = vmul.f32 1.442695, %v638_v7  ;;  %v825_v48 = vshrl.u32 %v1766_v23, 7 }
 0x285   :  { %v637_v19 = vsub.f32 0.0, %v612_v8 }
 0x286   :  { %v639_v52 = vsub.f32 0.0, %v614_v20  ;;  %999 = vpow2.f32 %v686_v41  ;;  %vm826_vm0 = vcmp.eq.s32.totalorder %v825_v48, 0 }
 0x287   :  { %v996_v17 = vpop.eup %995  ;;  %v684_v35 = vmul.f32 1.442695, %v637_v19 }
 0x288   :  { %v998_v53 = vpop.eup %997  ;;  %v709_v18 = vsub.f32 1.0, %v996_v17  ;;  %v688_v5 = vmul.f32 1.442695, %v639_v52 }
 0x289   :  { %v711_v26 = vsub.f32 1.0, %v998_v53  ;;  %1001 = vpow2.f32 %v684_v35 }
 0x28a   :  { %v734_v2 = vmul.f32 %v709_v18, %v709_v18  ;;  %1003 = vpow2.f32 %v688_v5 }
 0x28b   :  { %v736_v16 = vmul.f32 %v711_v26, %v711_v26 }
 0x28c   :  { %v759_v1 = vmul.f32 %v734_v2, %v609_v10  ;;  %v1000_v25 = vpop.eup %999 }
 0x28d   :  { %v761_v32 = vmul.f32 %v736_v16, %v611_v0  ;;  %v713_v45 = vsub.f32 1.0, %v1000_v25 }
 0x28e   :  { %v803_v4 = vsel %vm765_vm10, %v759_v1, 0.0 }
 0x28f   :  { %v1002_v24 = vpop.eup %1001  ;;  %v804_v40 = vadd.f32 %v803_v4, %v802_v42  ;;  %v738_v6 = vmul.f32 %v713_v45, %v713_v45  ;;  %v807_v28 = vsel %vm765_vm10, %v761_v32, 0.0 }
 0x290   :  { %v1004_v61 = vpop.eup %1003  ;;  %v712_v33 = vsub.f32 1.0, %v1002_v24 }
 0x291   :  { %v806_v54 = vadd.f32 %v805_v34, %v804_v40  ;;  %v714_v58 = vsub.f32 1.0, %v1004_v61  ;;  %v763_v31 = vmul.f32 %v738_v6, %v613_v55 }
 0x292   :  { %v737_v21 = vmul.f32 %v712_v33, %v712_v33 }
 0x293   :  { %v739_v51 = vmul.f32 %v714_v58, %v714_v58  ;;  %v808_v62 = vadd.f32 %v807_v28, %v806_v54  ;;  %v811_v10 = vsel %vm765_vm10, %v763_v31, 0.0 }
 0x294   :  { %v762_v11 = vmul.f32 %v737_v21, %v612_v8 }
 0x295   :  { %v764_v44 = vmul.f32 %v739_v51, %v614_v20 }
 0x296   :  { %v809_v38 = vsel %vm765_vm10, %v762_v11, 0.0 }
 0x297   :  { %v810_v47 = vadd.f32 %v809_v38, %v808_v62  ;;  %v813_v0 = vsel %vm765_vm10, %v764_v44, 0.0  ;;  %vm828_vm10 = vmand %vm826_vm0, %vm827_vm13 }
 0x299   :  { %v812_v56 = vadd.f32 %v811_v10, %v810_v47 }
 0x29b   :  { %v814_v13 = vadd.f32 %v813_v0, %v812_v56 }
 0x29d   :  { %815 = vadd.xlane.f32.xlu0 %v814_v13 }
 0x310   :  { %v816_v22 = vpop.xlane.xlu0 %815 }
 0x311   :  { %v817_v36 = vrot.slane %v816_v22, 4 }
 0x313   :  { %v818_v60 = vadd.f32 %v817_v36, %v816_v22 }
 0x315   :  { %v819_v50 = vrot.slane %v818_v60, 2 }
 0x317   :  { %v820_v30 = vadd.f32 %v819_v50, %v818_v60 }
 0x319   :  { %v821_v29 = vrot.slane %v820_v30, 1 }
 0x31b   :  { %v822_v27 = vadd.f32 %v821_v29, %v820_v30 }
 0x31d   :  { %848 = vpush %v822_v27 }
 0x34e   :  { %s849_s27 = spop %848 }
 0x34f   :  { %v829_v49 = vstv %s849_s27 }
 0x350   :  { %v830_v59 = vsel %vm828_vm10, %v829_v49, 0.0 }
 0x351   :  { %831 = vst [vmem:[#allocation2] sm:$0xff] %v830_v59 }
 0x352   :  { %842 = dma.vmem_to_hbm [thread:$0]  %s838_s23, 128, %s840_s26, [#allocation3]  }
 0x353   :  { %1029 = dma.done.wait [#allocation3], 128  }
 0x354   :  { %1030 = vsyncadd [#allocation3], 4294967168 }
 0x355   :  { %847 = vsyncpa [#allocation3], 1 }

</bundles_post_ra>
